<compile_context>
chip_gen: v7x
topology: tpu7x:2x2x1
jax: 0.10.0
libtpu: 0.0.40
codegen_flags: <defaults>
</compile_context>

<pallas_src>
import functools

import jax
import jax.numpy as jnp
from jax.experimental import pallas as pl
from jax.experimental.pallas import tpu as pltpu

EPS = 1e-5
PAD = 128  # lane width — all feature dims padded to this


def mlp_decoder_kernel(x_ref, w_ref, v_ref, o_ref, *, in_dim):
    # x_ref: [B, in_dim] f32 (raw, unpadded input — padding handled in-kernel)
    # w_ref: [4, PAD, PAD] bf16 (w1..w4, zero-padded, stored as [in, out])
    # v_ref: [16, PAD] f32  rows: b1,g1,be1, b2,g2,be2, b3,g3,be3, b4, <pad>
    # o_ref: [B, PAD] f32  (real logits live in columns 0..binary-1)
    vec = v_ref[...]
    # Bias/BN rows sliced once, before the layer chain (hoisted off the serial
    # matmul -> reduce -> rsqrt -> FMA path).
    b1, g1, be1 = vec[0:1], vec[1:2], vec[2:3]
    b2, g2, be2 = vec[3:4], vec[4:5], vec[5:6]
    b3, g3, be3 = vec[6:7], vec[7:8], vec[8:9]
    b4 = vec[9:10]

    inv_b = 1.0 / float(x_ref.shape[0])  # static batch size

    def layer(h_bf16, w_bf16, b, g, be):
        # fc (bf16 MXU operands, f32 accumulate) -> relu -> folded batchnorm.
        h = jnp.dot(h_bf16, w_bf16, preferred_element_type=jnp.float32) + b
        h = jnp.maximum(h, 0.0)
        # One-pass batch statistics (biased variance, matches PyTorch train).
        mean = jnp.sum(h, axis=0, keepdims=True) * inv_b
        msq = jnp.sum(h * h, axis=0, keepdims=True) * inv_b
        # Clamp: E[h^2]-E[h]^2 can cancel below 0 in f32 -> NaN via rsqrt.
        var = jnp.maximum(msq - mean * mean, 0.0)
        scale = g * jax.lax.rsqrt(var + EPS)
        shift = be - mean * scale
        return h * scale + shift  # single FMA per element

    # In-kernel cast to bf16; contract only against the first in_dim rows of w1
    # (rows in_dim..PAD-1 are zero anyway) — no wrapper-side padding needed.
    x_bf16 = x_ref[...].astype(jnp.bfloat16)
    w1 = w_ref[0][:in_dim, :]  # in_dim is sublane-aligned (multiple of 8)

    h = layer(x_bf16, w1, b1, g1, be1)
    h = layer(h.astype(jnp.bfloat16), w_ref[1], b2, g2, be2)
    h = layer(h.astype(jnp.bfloat16), w_ref[2], b3, g3, be3)

    # Classification head (padded to 128 output lanes -> unmasked full-lane store).
    y = jnp.dot(h.astype(jnp.bfloat16), w_ref[3],
                preferred_element_type=jnp.float32) + b4
    o_ref[...] = y


def mlp_decoder(x, w_packed, v_packed, binary):
    """x: [B, in_dim] f32 (raw). w_packed: [4,PAD,PAD] bf16. v_packed: [16,PAD] f32.

    Stack as many rows into B as possible per call (up to ~128 on v5e, ~256 on
    v6e/v7x) — per-call fixed cost is independent of B at these widths.
    """
    B, in_dim = x.shape
    vmem = pl.BlockSpec(memory_space=pltpu.MemorySpace.VMEM)
    out_pad = pl.pallas_call(
        functools.partial(mlp_decoder_kernel, in_dim=in_dim),
        out_shape=jax.ShapeDtypeStruct((B, PAD), jnp.float32),
        in_specs=[vmem, vmem, vmem],
        out_specs=vmem,
    )(x, w_packed, v_packed)
    return out_pad[:, :binary]


def init_params(key, in_dim, hidden_dim, out_dim, binary=1):
    """Deterministic synthetic parameters (shapes match the PyTorch module)."""
    ks = jax.random.split(key, 14)

    def lin(kw, kb, fan_in, fan_out):
        # Stored as [fan_in, fan_out] (transposed vs. PyTorch's [out, in]).
        w = jax.random.normal(kw, (fan_in, fan_out), jnp.float32) * 0.1
        b = jax.random.normal(kb, (1, fan_out), jnp.float32) * 0.05
        return w, b

    def bn(kg, kb, n):
        g = 1.0 + 0.1 * jax.random.normal(kg, (1, n), jnp.float32)
        b = 0.1 * jax.random.normal(kb, (1, n), jnp.float32)
        return g, b

    w1, b1 = lin(ks[0], ks[1], in_dim, hidden_dim)
    w2, b2 = lin(ks[2], ks[3], hidden_dim, hidden_dim)
    w3, b3 = lin(ks[4], ks[5], hidden_dim, out_dim)
    w4, b4 = lin(ks[6], ks[7], out_dim, binary)
    g1, be1 = bn(ks[8], ks[9], hidden_dim)
    g2, be2 = bn(ks[10], ks[11], hidden_dim)
    g3, be3 = bn(ks[12], ks[13], out_dim)

    return {
        "w1": w1, "b1": b1, "g1": g1, "be1": be1,
        "w2": w2, "b2": b2, "g2": g2, "be2": be2,
        "w3": w3, "b3": b3, "g3": g3, "be3": be3,
        "w4": w4, "b4": b4,
    }


def pack_params(p):
    """Pad every matrix/vector to 128 lanes and pack into two slabs (2 DMAs)."""
    def pad_mat(w):
        r, c = w.shape
        return jnp.zeros((PAD, PAD), jnp.float32).at[:r, :c].set(w)

    def pad_vec(v):
        v = v.reshape(-1)
        return jnp.zeros((PAD,), jnp.float32).at[: v.shape[0]].set(v)

    w_packed = jnp.stack(
        [pad_mat(p["w1"]), pad_mat(p["w2"]), pad_mat(p["w3"]), pad_mat(p["w4"])]
    ).astype(jnp.bfloat16)

    rows = [p["b1"], p["g1"], p["be1"],
            p["b2"], p["g2"], p["be2"],
            p["b3"], p["g3"], p["be3"],
            p["b4"]]
    v_packed = jnp.stack([pad_vec(r) for r in rows])              # [10, PAD]
    v_packed = jnp.concatenate(
        [v_packed, jnp.zeros((16 - v_packed.shape[0], PAD), jnp.float32)], axis=0
    )                                                             # [16, PAD]
    return w_packed, v_packed


def reference(x, p):
    """Pure-f32 JAX reference matching PyTorch training-mode forward."""
    def bn(h, g, b):
        m = jnp.mean(h, axis=0, keepdims=True)
        v = jnp.mean((h - m) ** 2, axis=0, keepdims=True)
        return g * (h - m) / jnp.sqrt(v + EPS) + b

    h = bn(jnp.maximum(x @ p["w1"] + p["b1"], 0.0), p["g1"], p["be1"])
    h = bn(jnp.maximum(h @ p["w2"] + p["b2"], 0.0), p["g2"], p["be2"])
    h = bn(jnp.maximum(h @ p["w3"] + p["b3"], 0.0), p["g3"], p["be3"])
    return h @ p["w4"] + p["b4"]


if __name__ == "__main__":
    # Small demo shapes (in_dim must be sublane-aligned, i.e. a multiple of 8,
    # for the in-kernel weight slice; it is here).
    B, in_dim, hidden_dim, out_dim, binary = 16, 32, 32, 16, 1

    key = jax.random.PRNGKey(0)
    kx, kp = jax.random.split(key)
    x = jax.random.normal(kx, (B, in_dim), jnp.float32)
    params = init_params(kp, in_dim, hidden_dim, out_dim, binary)
    w_packed, v_packed = pack_params(params)

    out = mlp_decoder(x, w_packed, v_packed, binary)
    out = jax.block_until_ready(out)

    ref = reference(x, params)
    assert out.shape == (B, binary), out.shape
    # bf16 MXU operands (f32 accumulation) -> loosened tolerance vs the f32 reference.
    max_err = jnp.max(jnp.abs(out - ref))
    assert jnp.allclose(out, ref, atol=5e-2, rtol=5e-2), max_err

    print("KERNEL_OK")
</pallas_src>

<mosaic_0001>
module attributes {stable_mosaic.version = 11 : i64} {
  func.func @mlp_decoder_kernel(%arg0: memref<16x32xf32, #tpu.memory_space<vmem>>, %arg1: memref<4x128x128xbf16, #tpu.memory_space<vmem>>, %arg2: memref<16x128xf32, #tpu.memory_space<vmem>>, %arg3: memref<16x128xf32, #tpu.memory_space<vmem>>) attributes {dimension_semantics = [], scalar_prefetch = 0 : i64, scratch_operands = 0 : i64, tpu.core_type = #tpu.core_type<tc>} {
    %c0 = arith.constant 0 : index
    %c0_0 = arith.constant 0 : index
    %0 = vector.load %arg2[%c0, %c0_0] : memref<16x128xf32, #tpu.memory_space<vmem>>, vector<16x128xf32>
    %1 = vector.extract_strided_slice %0 {offsets = [0, 0], sizes = [1, 128], strides = [1, 1]} : vector<16x128xf32> to vector<1x128xf32>
    %2 = vector.extract_strided_slice %0 {offsets = [1, 0], sizes = [1, 128], strides = [1, 1]} : vector<16x128xf32> to vector<1x128xf32>
    %3 = vector.extract_strided_slice %0 {offsets = [2, 0], sizes = [1, 128], strides = [1, 1]} : vector<16x128xf32> to vector<1x128xf32>
    %4 = vector.extract_strided_slice %0 {offsets = [3, 0], sizes = [1, 128], strides = [1, 1]} : vector<16x128xf32> to vector<1x128xf32>
    %5 = vector.extract_strided_slice %0 {offsets = [4, 0], sizes = [1, 128], strides = [1, 1]} : vector<16x128xf32> to vector<1x128xf32>
    %6 = vector.extract_strided_slice %0 {offsets = [5, 0], sizes = [1, 128], strides = [1, 1]} : vector<16x128xf32> to vector<1x128xf32>
    %7 = vector.extract_strided_slice %0 {offsets = [6, 0], sizes = [1, 128], strides = [1, 1]} : vector<16x128xf32> to vector<1x128xf32>
    %8 = vector.extract_strided_slice %0 {offsets = [7, 0], sizes = [1, 128], strides = [1, 1]} : vector<16x128xf32> to vector<1x128xf32>
    %9 = vector.extract_strided_slice %0 {offsets = [8, 0], sizes = [1, 128], strides = [1, 1]} : vector<16x128xf32> to vector<1x128xf32>
    %10 = vector.extract_strided_slice %0 {offsets = [9, 0], sizes = [1, 128], strides = [1, 1]} : vector<16x128xf32> to vector<1x128xf32>
    %c0_1 = arith.constant 0 : index
    %c0_2 = arith.constant 0 : index
    %11 = vector.load %arg0[%c0_1, %c0_2] : memref<16x32xf32, #tpu.memory_space<vmem>>, vector<16x32xf32>
    %12 = arith.truncf %11 : vector<16x32xf32> to vector<16x32xbf16>
    %c0_3 = arith.constant 0 : index
    %c0_4 = arith.constant 0 : index
    %c0_5 = arith.constant 0 : index
    %13 = vector.load %arg1[%c0_3, %c0_4, %c0_5] : memref<4x128x128xbf16, #tpu.memory_space<vmem>>, vector<1x128x128xbf16>
    %14 = vector.shape_cast %13 : vector<1x128x128xbf16> to vector<128x128xbf16>
    %15 = vector.extract_strided_slice %14 {offsets = [0, 0], sizes = [32, 128], strides = [1, 1]} : vector<128x128xbf16> to vector<32x128xbf16>
    %cst = arith.constant dense<0.000000e+00> : vector<16x128xf32>
    %16 = tpu.matmul %12, %15, %cst {dimension_numbers = #tpu.dot_dimension_numbers<[1], [0], [0], [1], [0, 0, 1, 1], [], []>} : vector<16x32xbf16>, vector<32x128xbf16>, vector<16x128xf32> -> vector<16x128xf32>
    %17 = vector.broadcast %1 : vector<1x128xf32> to vector<16x128xf32>
    %18 = arith.addf %16, %17 : vector<16x128xf32>
    %cst_6 = arith.constant 0.000000e+00 : f32
    %19 = vector.broadcast %cst_6 : f32 to vector<16x128xf32>
    %20 = arith.maximumf %18, %19 : vector<16x128xf32>
    %cst_7 = arith.constant dense<0.000000e+00> : vector<128xf32>
    %21 = vector.multi_reduction <add>, %20, %cst_7 [0] : vector<16x128xf32> to vector<128xf32>
    %22 = vector.shape_cast %21 : vector<128xf32> to vector<1x128xf32>
    %cst_8 = arith.constant 6.250000e-02 : f32
    %23 = vector.broadcast %cst_8 : f32 to vector<1x128xf32>
    %24 = arith.mulf %22, %23 : vector<1x128xf32>
    %25 = arith.mulf %20, %20 : vector<16x128xf32>
    %cst_9 = arith.constant dense<0.000000e+00> : vector<128xf32>
    %26 = vector.multi_reduction <add>, %25, %cst_9 [0] : vector<16x128xf32> to vector<128xf32>
    %27 = vector.shape_cast %26 : vector<128xf32> to vector<1x128xf32>
    %cst_10 = arith.constant 6.250000e-02 : f32
    %28 = vector.broadcast %cst_10 : f32 to vector<1x128xf32>
    %29 = arith.mulf %27, %28 : vector<1x128xf32>
    %30 = arith.mulf %24, %24 : vector<1x128xf32>
    %31 = arith.subf %29, %30 : vector<1x128xf32>
    %cst_11 = arith.constant 0.000000e+00 : f32
    %32 = vector.broadcast %cst_11 : f32 to vector<1x128xf32>
    %33 = arith.maximumf %31, %32 : vector<1x128xf32>
    %cst_12 = arith.constant 9.99999974E-6 : f32
    %34 = vector.broadcast %cst_12 : f32 to vector<1x128xf32>
    %35 = arith.addf %33, %34 : vector<1x128xf32>
    %36 = math.rsqrt %35 : vector<1x128xf32>
    %37 = arith.mulf %2, %36 : vector<1x128xf32>
    %38 = arith.mulf %24, %37 : vector<1x128xf32>
    %39 = arith.subf %3, %38 : vector<1x128xf32>
    %40 = vector.broadcast %37 : vector<1x128xf32> to vector<16x128xf32>
    %41 = arith.mulf %20, %40 : vector<16x128xf32>
    %42 = vector.broadcast %39 : vector<1x128xf32> to vector<16x128xf32>
    %43 = arith.addf %41, %42 : vector<16x128xf32>
    %44 = arith.truncf %43 : vector<16x128xf32> to vector<16x128xbf16>
    %c1 = arith.constant 1 : index
    %c0_13 = arith.constant 0 : index
    %c0_14 = arith.constant 0 : index
    %45 = vector.load %arg1[%c1, %c0_13, %c0_14] : memref<4x128x128xbf16, #tpu.memory_space<vmem>>, vector<1x128x128xbf16>
    %46 = vector.shape_cast %45 : vector<1x128x128xbf16> to vector<128x128xbf16>
    %cst_15 = arith.constant dense<0.000000e+00> : vector<16x128xf32>
    %47 = tpu.matmul %44, %46, %cst_15 {dimension_numbers = #tpu.dot_dimension_numbers<[1], [0], [0], [1], [0, 0, 1, 1], [], []>} : vector<16x128xbf16>, vector<128x128xbf16>, vector<16x128xf32> -> vector<16x128xf32>
    %48 = vector.broadcast %4 : vector<1x128xf32> to vector<16x128xf32>
    %49 = arith.addf %47, %48 : vector<16x128xf32>
    %cst_16 = arith.constant 0.000000e+00 : f32
    %50 = vector.broadcast %cst_16 : f32 to vector<16x128xf32>
    %51 = arith.maximumf %49, %50 : vector<16x128xf32>
    %cst_17 = arith.constant dense<0.000000e+00> : vector<128xf32>
    %52 = vector.multi_reduction <add>, %51, %cst_17 [0] : vector<16x128xf32> to vector<128xf32>
    %53 = vector.shape_cast %52 : vector<128xf32> to vector<1x128xf32>
    %cst_18 = arith.constant 6.250000e-02 : f32
    %54 = vector.broadcast %cst_18 : f32 to vector<1x128xf32>
    %55 = arith.mulf %53, %54 : vector<1x128xf32>
    %56 = arith.mulf %51, %51 : vector<16x128xf32>
    %cst_19 = arith.constant dense<0.000000e+00> : vector<128xf32>
    %57 = vector.multi_reduction <add>, %56, %cst_19 [0] : vector<16x128xf32> to vector<128xf32>
    %58 = vector.shape_cast %57 : vector<128xf32> to vector<1x128xf32>
    %cst_20 = arith.constant 6.250000e-02 : f32
    %59 = vector.broadcast %cst_20 : f32 to vector<1x128xf32>
    %60 = arith.mulf %58, %59 : vector<1x128xf32>
    %61 = arith.mulf %55, %55 : vector<1x128xf32>
    %62 = arith.subf %60, %61 : vector<1x128xf32>
    %cst_21 = arith.constant 0.000000e+00 : f32
    %63 = vector.broadcast %cst_21 : f32 to vector<1x128xf32>
    %64 = arith.maximumf %62, %63 : vector<1x128xf32>
    %cst_22 = arith.constant 9.99999974E-6 : f32
    %65 = vector.broadcast %cst_22 : f32 to vector<1x128xf32>
    %66 = arith.addf %64, %65 : vector<1x128xf32>
    %67 = math.rsqrt %66 : vector<1x128xf32>
    %68 = arith.mulf %5, %67 : vector<1x128xf32>
    %69 = arith.mulf %55, %68 : vector<1x128xf32>
    %70 = arith.subf %6, %69 : vector<1x128xf32>
    %71 = vector.broadcast %68 : vector<1x128xf32> to vector<16x128xf32>
    %72 = arith.mulf %51, %71 : vector<16x128xf32>
    %73 = vector.broadcast %70 : vector<1x128xf32> to vector<16x128xf32>
    %74 = arith.addf %72, %73 : vector<16x128xf32>
    %75 = arith.truncf %74 : vector<16x128xf32> to vector<16x128xbf16>
    %c2 = arith.constant 2 : index
    %c0_23 = arith.constant 0 : index
    %c0_24 = arith.constant 0 : index
    %76 = vector.load %arg1[%c2, %c0_23, %c0_24] : memref<4x128x128xbf16, #tpu.memory_space<vmem>>, vector<1x128x128xbf16>
    %77 = vector.shape_cast %76 : vector<1x128x128xbf16> to vector<128x128xbf16>
    %cst_25 = arith.constant dense<0.000000e+00> : vector<16x128xf32>
    %78 = tpu.matmul %75, %77, %cst_25 {dimension_numbers = #tpu.dot_dimension_numbers<[1], [0], [0], [1], [0, 0, 1, 1], [], []>} : vector<16x128xbf16>, vector<128x128xbf16>, vector<16x128xf32> -> vector<16x128xf32>
    %79 = vector.broadcast %7 : vector<1x128xf32> to vector<16x128xf32>
    %80 = arith.addf %78, %79 : vector<16x128xf32>
    %cst_26 = arith.constant 0.000000e+00 : f32
    %81 = vector.broadcast %cst_26 : f32 to vector<16x128xf32>
    %82 = arith.maximumf %80, %81 : vector<16x128xf32>
    %cst_27 = arith.constant dense<0.000000e+00> : vector<128xf32>
    %83 = vector.multi_reduction <add>, %82, %cst_27 [0] : vector<16x128xf32> to vector<128xf32>
    %84 = vector.shape_cast %83 : vector<128xf32> to vector<1x128xf32>
    %cst_28 = arith.constant 6.250000e-02 : f32
    %85 = vector.broadcast %cst_28 : f32 to vector<1x128xf32>
    %86 = arith.mulf %84, %85 : vector<1x128xf32>
    %87 = arith.mulf %82, %82 : vector<16x128xf32>
    %cst_29 = arith.constant dense<0.000000e+00> : vector<128xf32>
    %88 = vector.multi_reduction <add>, %87, %cst_29 [0] : vector<16x128xf32> to vector<128xf32>
    %89 = vector.shape_cast %88 : vector<128xf32> to vector<1x128xf32>
    %cst_30 = arith.constant 6.250000e-02 : f32
    %90 = vector.broadcast %cst_30 : f32 to vector<1x128xf32>
    %91 = arith.mulf %89, %90 : vector<1x128xf32>
    %92 = arith.mulf %86, %86 : vector<1x128xf32>
    %93 = arith.subf %91, %92 : vector<1x128xf32>
    %cst_31 = arith.constant 0.000000e+00 : f32
    %94 = vector.broadcast %cst_31 : f32 to vector<1x128xf32>
    %95 = arith.maximumf %93, %94 : vector<1x128xf32>
    %cst_32 = arith.constant 9.99999974E-6 : f32
    %96 = vector.broadcast %cst_32 : f32 to vector<1x128xf32>
    %97 = arith.addf %95, %96 : vector<1x128xf32>
    %98 = math.rsqrt %97 : vector<1x128xf32>
    %99 = arith.mulf %8, %98 : vector<1x128xf32>
    %100 = arith.mulf %86, %99 : vector<1x128xf32>
    %101 = arith.subf %9, %100 : vector<1x128xf32>
    %102 = vector.broadcast %99 : vector<1x128xf32> to vector<16x128xf32>
    %103 = arith.mulf %82, %102 : vector<16x128xf32>
    %104 = vector.broadcast %101 : vector<1x128xf32> to vector<16x128xf32>
    %105 = arith.addf %103, %104 : vector<16x128xf32>
    %106 = arith.truncf %105 : vector<16x128xf32> to vector<16x128xbf16>
    %c3 = arith.constant 3 : index
    %c0_33 = arith.constant 0 : index
    %c0_34 = arith.constant 0 : index
    %107 = vector.load %arg1[%c3, %c0_33, %c0_34] : memref<4x128x128xbf16, #tpu.memory_space<vmem>>, vector<1x128x128xbf16>
    %108 = vector.shape_cast %107 : vector<1x128x128xbf16> to vector<128x128xbf16>
    %cst_35 = arith.constant dense<0.000000e+00> : vector<16x128xf32>
    %109 = tpu.matmul %106, %108, %cst_35 {dimension_numbers = #tpu.dot_dimension_numbers<[1], [0], [0], [1], [0, 0, 1, 1], [], []>} : vector<16x128xbf16>, vector<128x128xbf16>, vector<16x128xf32> -> vector<16x128xf32>
    %110 = vector.broadcast %10 : vector<1x128xf32> to vector<16x128xf32>
    %111 = arith.addf %109, %110 : vector<16x128xf32>
    %c0_36 = arith.constant 0 : index
    %c0_37 = arith.constant 0 : index
    %112 = vector.load %arg3[%c0_36, %c0_37] : memref<16x128xf32, #tpu.memory_space<vmem>>, vector<16x128xf32>
    tpu.vector_store %arg3[%c0_36, %c0_37], %111 {strides = array<i32>} : memref<16x128xf32, #tpu.memory_space<vmem>>, vector<16x128xf32>,
    return
  }
}

</mosaic_0001>

<bundles_post_ra>
// kernel: tpu_custom_call.1
= control target key start
LH: loop header
LB: loop body
LE: loop exit
PB: predicated region body
PF: predicated region fallthrough
CT: control target
= control target key end

     0   :  { %8 = vsyncpa [#allocation3], 0  ;;  %s1019_s0 = inlined_call_operand.hbm [shape: f32[16,32], index: 0, kind: input, shape index: {}]   ;;  %s1020_s1 = inlined_call_operand.hbm [shape: bf16[4,128,128], index: 1, kind: input, shape index: {}]   ;;  %s1021_s2 = inlined_call_operand.hbm [shape: f32[16,128], index: 2, kind: input, shape index: {}]   ;;  %s1022_s3 = inlined_call_operand.hbm [shape: f32[16,128], index: 3, kind: output, shape index: {}]  }
   0x1   :  { %9 = vsyncpa [#allocation6], 0 }
   0x2   :  { %10 = vsyncpa [#allocation4], 0  ;;  %s870_s12 = smov [#allocation5]   ;;  %s776_s16 = scalar_lea.hbm %s1020_s1, 4096 }
   0x3   :  { %s28_s13 = sshll.u32 %s870_s12, 4  ;;  %p777_p0 = scmp.ne.s32.totalorder %s1020_s1, %s776_s16  ;;  %s29_s13 = int_to_ptr.vmem [resolvable:$true] %s28_s13 }
   0x4   :  { %p780_p1 = scmp.lt.u32.totalorder %s776_s16, %s1020_s1 }
   0x6   :  { %p782_p2 = pnand %p780_p1, %p777_p0 }
   0x8   :  { %785 = shalt.err (!%p782_p2)
}
   0x9   :  { %s786_s21 = scalar_lea.vmem %s29_s13, 4096  ;;  %p791_p4 = scmp.lt.s32.totalorder %s29_s13, %s29_s13 }
   0xa   :  { %p787_p3 = scmp.ne.s32.totalorder %s29_s13, %s786_s21  ;;  %p792_p5 = scmp.lt.s32.totalorder %s786_s21, %s786_s21 }
   0xc   :  { %p793_p6 = por %p792_p5, %p791_p4 }
   0xe   :  { %p794_p7 = pnand %p793_p6, %p787_p3 }
  0x10   :  { %797 = shalt.err (!%p794_p7)
}
  0x11   :  { %s871_s22 = smov 64   ;;  %s872_s23 = smov 4  }
  0x12   :  { %34 = dma.hbm_to_vmem [thread:$0]  %s1020_s1, 4096, %s29_s13, [#allocation6], %s871_s22, %s871_s22, %s872_s23  }
  0x13   :  { %s873_s26 = smov [#allocation2]   ;;  %s798_s30 = scalar_lea.hbm %s1019_s0, 256 }
  0x14   :  { %s16_s27 = sshll.u32 %s873_s26, 4  ;;  %p799_p8 = scmp.ne.s32.totalorder %s1019_s0, %s798_s30  ;;  %s17_s27 = int_to_ptr.vmem [resolvable:$true] %s16_s27 }
  0x15   :  { %p802_p9 = scmp.lt.u32.totalorder %s798_s30, %s1019_s0 }
  0x17   :  { %p804_p10 = pnand %p802_p9, %p799_p8 }
  0x19   :  { %807 = shalt.err (!%p804_p10)
}
  0x1a   :  { %s808_s8 = scalar_lea.vmem %s17_s27, 256  ;;  %p813_p12 = scmp.lt.s32.totalorder %s17_s27, %s17_s27 }
  0x1b   :  { %p809_p11 = scmp.ne.s32.totalorder %s17_s27, %s808_s8  ;;  %p814_p13 = scmp.lt.s32.totalorder %s808_s8, %s808_s8 }
  0x1d   :  { %p815_p0 = por %p814_p13, %p813_p12 }
  0x1f   :  { %p816_p1 = pnand %p815_p0, %p809_p11 }
  0x21   :  { %819 = shalt.err (!%p816_p1)
}
  0x22   :  { %s874_s1 = smov 128   ;;  %s875_s9 = smov 8  }
  0x23   :  { %22 = dma.hbm_to_vmem [thread:$0]  %s1019_s0, 256, %s17_s27, [#allocation3], %s874_s1, %s874_s1, %s875_s9  }
  0x24   :  { %s876_s12 = smov [#allocation7]   ;;  %s820_s16 = scalar_lea.hbm %s1021_s2, 256 }
  0x25   :  { %s40_s13 = sshll.u32 %s876_s12, 4  ;;  %p821_p2 = scmp.ne.s32.totalorder %s1021_s2, %s820_s16  ;;  %s41_s13 = int_to_ptr.vmem [resolvable:$true] %s40_s13 }
  0x26   :  { %p824_p3 = scmp.lt.u32.totalorder %s820_s16, %s1021_s2 }
  0x28   :  { %p826_p4 = pnand %p824_p3, %p821_p2 }
  0x2a   :  { %829 = shalt.err (!%p826_p4)
}
  0x2b   :  { %s830_s21 = scalar_lea.vmem %s41_s13, 256  ;;  %p835_p6 = scmp.lt.s32.totalorder %s41_s13, %s41_s13 }
  0x2c   :  { %p831_p5 = scmp.ne.s32.totalorder %s41_s13, %s830_s21  ;;  %p836_p7 = scmp.lt.s32.totalorder %s830_s21, %s830_s21 }
  0x2e   :  { %p837_p8 = por %p836_p7, %p835_p6 }
  0x30   :  { %p838_p9 = pnand %p837_p8, %p831_p5 }
  0x32   :  { %841 = shalt.err (!%p838_p9)
}
  0x33   :  { %46 = dma.hbm_to_vmem [thread:$0]  %s1021_s2, 256, %s41_s13, [#allocation6], %s874_s1, %s874_s1, %s875_s9  }
  0x34   :  { %864 = dma.done.wait [#allocation3], 256  }
  0x35   :  { %865 = vsyncadd [#allocation3], 4294967040 }
  0x36   :  { %866 = dma.done.wait [#allocation6], 4352  }
  0x37   :  { %867 = vsyncadd [#allocation6], 4294962944  ;;  %v877_v0 = vmov 0.0   ;;  %vm878_vm0 = vmmov 0   ;;  %v744_v1 = vld [vmem:[#allocation5] sm:$0xff]   ;;  %v745_v2 = vld [vmem:[#allocation5 + $0x8] sm:$0xff]   ;;  %v66_v14 = vlaneseq }
  0x38   :  { %666 = vmatprep.subr.bf16.mxu0 %v877_v0  ;;  %670 = vmatprep.mubr.msk.bf16.mxu0 %vm878_vm0, %v877_v0  ;;  %v59_v3 = vld [vmem:[#allocation2] sm:$0xff]  ;;  %v60_v4 = vld [vmem:[#allocation2 + $0x8] sm:$0xff]  ;;  %vm82_vm1 = vcmask 261120   ;;  %v746_v6 = vld [vmem:[#allocation5 + $0x40] sm:$0xff]   ;;  %s879_s2 = smov [#allocation8]  }
  0x39   :  { %674 = vmatprep.subr.bf16.mxu1 %v877_v0  ;;  %690 = vmatprep.mubr.msk.bf16.mxu1 %vm878_vm0, %v877_v0  ;;  %v61_v5 = vpack.c.bf16 %v60_v4, %v59_v3  ;;  %v747_v7 = vld [vmem:[#allocation5 + $0x48] sm:$0xff]   ;;  %v748_v8 = vld [vmem:[#allocation5 + $0x50] sm:$0xff]   ;;  %v749_v9 = vld [vmem:[#allocation5 + $0x58] sm:$0xff]   ;;  %v960_v15 = vshrl.u32 %v66_v14, 7  ;;  %s596_s23 = sshll.u32 %s879_s2, 4  ;;  %s597_s23 = int_to_ptr.vmem [resolvable:$true] %s596_s23 }
  0x3a   :  { %667 = vmatpush3.bf16.msra.mxu0 %v744_v1  ;;  %675 = vmatpush3.bf16.msra.mxu1 %v746_v6  ;;  %v750_v10 = vld [vmem:[#allocation5 + $0x60] sm:$0xff]   ;;  %v751_v11 = vld [vmem:[#allocation5 + $0x68] sm:$0xff]   ;;  %v752_v12 = vld [vmem:[#allocation5 + $0x70] sm:$0xff]   ;;  %s842_s24 = scalar_lea.vmem %s597_s23, 256  ;;  %p847_p11 = scmp.lt.s32.totalorder %s597_s23, %s597_s23 }
  0x3b   :  { %668 = vmatprep.subr.bf16.mxu0 %v877_v0  ;;  %676 = vmatprep.subr.bf16.mxu1 %v877_v0  ;;  %v753_v13 = vld [vmem:[#allocation5 + $0x78] sm:$0xff]   ;;  %v68_v16 = vsub.s32 0, %v960_v15  ;;  %v963_v17 = vld [vmem:[#allocation7] sm:$0xff]  ;;  %v160_v49 = vsub.s32 1, %v960_v15  ;;  %v166_v57 = vsub.s32 2, %v960_v15  ;;  %v755_v1 = vld [vmem:[#allocation5 + $0x88] sm:$0xff]   ;;  %p843_p10 = scmp.ne.s32.totalorder %s597_s23, %s842_s24  ;;  %p848_p12 = scmp.lt.s32.totalorder %s842_s24, %s842_s24 }
  0x3c   :  { %v754_v63 = vld [vmem:[#allocation5 + $0x80] sm:$0xff]   ;;  %v757_v3 = vld [vmem:[#allocation5 + $0x98] sm:$0xff]   ;;  %v760_v6 = vld [vmem:[#allocation5 + $0xb0] sm:$0xff]  }
  0x3d   :  { %v69_v18 = vrot.slane %v963_v17, %v68_v16  ;;  %v758_v4 = vld [vmem:[#allocation5 + $0xa0] sm:$0xff]   ;;  %p849_p13 = por %p848_p12, %p847_p11 }
  0x3e   :  { %669 = vmatpush3.bf16.msra.mxu0 %v745_v2  ;;  %677 = vmatpush3.bf16.msra.mxu1 %v747_v7  ;;  %v756_v2 = vld [vmem:[#allocation5 + $0x90] sm:$0xff]   ;;  %v761_v7 = vld [vmem:[#allocation5 + $0xb8] sm:$0xff]  }
  0x3f   :  { %694 = vmatprep.subr.bf16.mxu0 %v877_v0  ;;  %678 = vmatprep.subr.bf16.mxu1 %v877_v0  ;;  %p850_p0 = pnand %p849_p13, %p843_p10 }
  0x41   :  { %671 = vmatmul.mubr.msk.bf16.vlgmr.msra.gmra.mrb[0].mxu0 %vm82_vm1, %v61_v5  ;;  %v759_v5 = vld [vmem:[#allocation5 + $0xa8] sm:$0xff]  }
  0x42   :  { %710 = vmatprep.mubr.msk.bf16.mxu0 %vm878_vm0, %v877_v0  ;;  %679 = vmatpush3.bf16.msra.mxu1 %v748_v8  ;;  %v190_v8 = vsub.s32 3, %v960_v15 }
  0x43   :  { %680 = vmatprep.subr.bf16.mxu1 %v877_v0  ;;  %695 = vmatpush3.bf16.msra.mxu0 %v754_v63  ;;  %v767_v63 = vld [vmem:[#allocation5 + $0xe8] sm:$0xff]  }
  0x44   :  { %696 = vmatprep.subr.bf16.mxu0 %v877_v0 }
  0x46   :  { %681 = vmatpush3.bf16.msra.mxu1 %v749_v9  ;;  %v191_v9 = vrot.slane %v963_v17, %v190_v8 }
  0x47   :  { %682 = vmatprep.subr.bf16.mxu1 %v877_v0  ;;  %697 = vmatpush3.bf16.msra.mxu0 %v755_v1  ;;  %v768_v1 = vld [vmem:[#allocation5 + $0xf0] sm:$0xff]  }
  0x48   :  { %698 = vmatprep.subr.bf16.mxu0 %v877_v0 }
  0x4a   :  { %683 = vmatpush3.bf16.msra.mxu1 %v750_v10 }
  0x4b   :  { %684 = vmatprep.subr.bf16.mxu1 %v877_v0  ;;  %699 = vmatpush3.bf16.msra.mxu0 %v756_v2  ;;  %v769_v2 = vld [vmem:[#allocation5 + $0xf8] sm:$0xff]  }
  0x4c   :  { %700 = vmatprep.subr.bf16.mxu0 %v877_v0 }
  0x4e   :  { %685 = vmatpush3.bf16.msra.mxu1 %v751_v11 }
  0x4f   :  { %686 = vmatprep.subr.bf16.mxu1 %v877_v0  ;;  %701 = vmatpush3.bf16.msra.mxu0 %v757_v3  ;;  %v344_v3 = vsub.s32 6, %v960_v15 }
  0x50   :  { %702 = vmatprep.subr.bf16.mxu0 %v877_v0 }
  0x52   :  { %687 = vmatpush3.bf16.msra.mxu1 %v752_v12 }
  0x53   :  { %688 = vmatprep.subr.bf16.mxu1 %v877_v0  ;;  %703 = vmatpush3.bf16.msra.mxu0 %v758_v4  ;;  %v345_v4 = vrot.slane %v963_v17, %v344_v3 }
  0x54   :  { %704 = vmatprep.subr.bf16.mxu0 %v877_v0 }
  0x56   :  { %689 = vmatpush3.bf16.msra.mxu1 %v753_v13 }
  0x57   :  { %714 = vmatprep.subr.bf16.mxu1 %v877_v0  ;;  %705 = vmatpush3.bf16.msra.mxu0 %v759_v5 }
  0x58   :  { %706 = vmatprep.subr.bf16.mxu0 %v877_v0 }
  0x5b   :  { %707 = vmatpush3.bf16.msra.mxu0 %v760_v6 }
  0x5c   :  { %708 = vmatprep.subr.bf16.mxu0 %v877_v0 }
  0x5f   :  { %709 = vmatpush3.bf16.msra.mxu0 %v761_v7 }
 0x114   :  { %v120_v19 = vpop.f32.mrb[0].mxu0 }
 0x115   :  { %v121_v20 = vadd.f32 %v120_v19, %v69_v18  ;;  %v672_v21 = vpop.f32.mrb[1].mxu0 }
 0x116   :  { %v123_v22 = vpop.f32.mrb[2].mxu0 }
 0x117   :  { %v127_v23 = vmax.f32 %v121_v20, 0.0  ;;  %v124_v24 = vadd.f32 %v123_v22, %v69_v18  ;;  %v673_v25 = vpop.f32.mrb[3].mxu0 }
 0x119   :  { %v128_v26 = vmax.f32 %v124_v24, 0.0  ;;  %v137_v27 = vmul.f32 %v127_v23, %v127_v23 }
 0x11b   :  { %v129_v28 = vadd.f32 %v128_v26, %v127_v23  ;;  %v138_v29 = vmul.f32 %v128_v26, %v128_v26 }
 0x11d   :  { %v130_v30 = vrot.slane %v129_v28, 4  ;;  %v139_v31 = vadd.f32 %v138_v29, %v137_v27 }
 0x11f   :  { %v131_v32 = vadd.f32 %v130_v30, %v129_v28  ;;  %v140_v33 = vrot.slane %v139_v31, 4 }
 0x121   :  { %v132_v34 = vrot.slane %v131_v32, 2  ;;  %v141_v35 = vadd.f32 %v140_v33, %v139_v31 }
 0x123   :  { %v133_v36 = vadd.f32 %v132_v34, %v131_v32  ;;  %v142_v37 = vrot.slane %v141_v35, 2 }
 0x125   :  { %v134_v38 = vrot.slane %v133_v36, 1  ;;  %v143_v39 = vadd.f32 %v142_v37, %v141_v35 }
 0x127   :  { %v135_v40 = vadd.f32 %v134_v38, %v133_v36  ;;  %v144_v41 = vrot.slane %v143_v39, 1 }
 0x129   :  { %v136_v42 = vmul.f32 0.0625, %v135_v40  ;;  %v145_v43 = vadd.f32 %v144_v41, %v143_v39 }
 0x12b   :  { %v146_v44 = vmul.f32 0.0625, %v145_v43  ;;  %v147_v45 = vmul.f32 %v136_v42, %v136_v42  ;;  %v314_v43 = vsub.s32 4, %v960_v15 }
 0x12d   :  { %v148_v46 = vsub.f32 %v146_v44, %v147_v45 }
 0x12f   :  { %v149_v47 = vmax.f32 %v148_v46, 0.0 }
 0x131   :  { %v150_v48 = vadd.f32 1e-05, %v149_v47 }
 0x133   :  { %770 = vrsqrt.f32 %v150_v48 }
 0x13d   :  { %v771_v50 = vpop.eup %770 }
 0x13e   :  { %v152_v51 = vmul.f32 %v771_v50, %v963_v17 }
 0x140   :  { %v153_v52 = vmul.f32 %v152_v51, %v136_v42  ;;  %v161_v53 = vrot.slane %v152_v51, %v160_v49 }
 0x142   :  { %v163_v54 = vmul.f32 %v161_v53, %v128_v26  ;;  %v155_v55 = vrot.slane %v153_v52, 7  ;;  %v162_v56 = vmul.f32 %v161_v53, %v127_v23  ;;  %v320_v52 = vsub.s32 5, %v960_v15 }
 0x144   :  { %v157_v58 = vsub.f32 %v963_v17, %v155_v55 }
 0x146   :  { %v167_v59 = vrot.slane %v157_v58, %v166_v57  ;;  %v762_v58 = vld [vmem:[#allocation5 + $0xc0] sm:$0xff]  }
 0x148   :  { %v168_v60 = vadd.f32 %v167_v59, %v162_v56  ;;  %v169_v61 = vadd.f32 %v167_v59, %v163_v54  ;;  %v763_v59 = vld [vmem:[#allocation5 + $0xc8] sm:$0xff]  }
 0x14a   :  { %v170_v62 = vpack.c.bf16 %v169_v61, %v168_v60  ;;  %v764_v60 = vld [vmem:[#allocation5 + $0xd0] sm:$0xff]   ;;  %v765_v61 = vld [vmem:[#allocation5 + $0xd8] sm:$0xff]  }
 0x14c   :  { %691 = vmatmul.mubr.bf16.vlgmr.msra.gmra.mrb[0].mxu1 %v170_v62  ;;  %v766_v62 = vld [vmem:[#allocation5 + $0xe0] sm:$0xff]  }
 0x14d   :  { %730 = vmatprep.mubr.msk.bf16.mxu1 %vm878_vm0, %v877_v0  ;;  %715 = vmatpush3.bf16.msra.mxu1 %v762_v58 }
 0x14e   :  { %716 = vmatprep.subr.bf16.mxu1 %v877_v0 }
 0x151   :  { %717 = vmatpush3.bf16.msra.mxu1 %v763_v59 }
 0x152   :  { %718 = vmatprep.subr.bf16.mxu1 %v877_v0 }
 0x155   :  { %719 = vmatpush3.bf16.msra.mxu1 %v764_v60 }
 0x156   :  { %720 = vmatprep.subr.bf16.mxu1 %v877_v0 }
 0x159   :  { %721 = vmatpush3.bf16.msra.mxu1 %v765_v61 }
 0x15a   :  { %722 = vmatprep.subr.bf16.mxu1 %v877_v0 }
 0x15d   :  { %723 = vmatpush3.bf16.msra.mxu1 %v766_v62 }
 0x15e   :  { %724 = vmatprep.subr.bf16.mxu1 %v877_v0 }
 0x161   :  { %725 = vmatpush3.bf16.msra.mxu1 %v767_v63 }
 0x162   :  { %726 = vmatprep.subr.bf16.mxu1 %v877_v0 }
 0x165   :  { %727 = vmatpush3.bf16.msra.mxu1 %v768_v1 }
 0x166   :  { %728 = vmatprep.subr.bf16.mxu1 %v877_v0 }
 0x169   :  { %729 = vmatpush3.bf16.msra.mxu1 %v769_v2 }
 0x21f   :  { %v274_v10 = vpop.f32.mrb[0].mxu1 }
 0x220   :  { %v275_v11 = vadd.f32 %v274_v10, %v191_v9  ;;  %v692_v12 = vpop.f32.mrb[1].mxu1 }
 0x221   :  { %v277_v13 = vpop.f32.mrb[2].mxu1 }
 0x222   :  { %v281_v14 = vmax.f32 %v275_v11, 0.0  ;;  %v278_v18 = vadd.f32 %v277_v13, %v191_v9  ;;  %v693_v19 = vpop.f32.mrb[3].mxu1 }
 0x224   :  { %v282_v20 = vmax.f32 %v278_v18, 0.0  ;;  %v291_v21 = vmul.f32 %v281_v14, %v281_v14 }
 0x226   :  { %v283_v22 = vadd.f32 %v282_v20, %v281_v14  ;;  %v292_v23 = vmul.f32 %v282_v20, %v282_v20 }
 0x228   :  { %v284_v24 = vrot.slane %v283_v22, 4  ;;  %v293_v25 = vadd.f32 %v292_v23, %v291_v21 }
 0x22a   :  { %v285_v26 = vadd.f32 %v284_v24, %v283_v22  ;;  %v294_v27 = vrot.slane %v293_v25, 4 }
 0x22c   :  { %v286_v28 = vrot.slane %v285_v26, 2  ;;  %v295_v29 = vadd.f32 %v294_v27, %v293_v25 }
 0x22e   :  { %v287_v30 = vadd.f32 %v286_v28, %v285_v26  ;;  %v296_v31 = vrot.slane %v295_v29, 2 }
 0x230   :  { %v288_v32 = vrot.slane %v287_v30, 1  ;;  %v297_v33 = vadd.f32 %v296_v31, %v295_v29 }
 0x232   :  { %v289_v34 = vadd.f32 %v288_v32, %v287_v30  ;;  %v298_v35 = vrot.slane %v297_v33, 1 }
 0x234   :  { %v290_v36 = vmul.f32 0.0625, %v289_v34  ;;  %v299_v37 = vadd.f32 %v298_v35, %v297_v33 }
 0x236   :  { %v300_v38 = vmul.f32 0.0625, %v299_v37  ;;  %v301_v39 = vmul.f32 %v290_v36, %v290_v36  ;;  %v468_v37 = vsub.s32 7, %v960_v15 }
 0x238   :  { %v302_v40 = vsub.f32 %v300_v38, %v301_v39 }
 0x23a   :  { %v303_v41 = vmax.f32 %v302_v40, 0.0 }
 0x23c   :  { %v304_v42 = vadd.f32 1e-05, %v303_v41 }
 0x23e   :  { %772 = vrsqrt.f32 %v304_v42  ;;  %v58_v42 = vld [vmem:[#allocation7 + $0x8] sm:$0xff] }
 0x248   :  { %v773_v44 = vpop.eup %772 }
 0x249   :  { %v306_v45 = vmul.f32 %v773_v44, %v963_v17 }
 0x24b   :  { %v307_v46 = vmul.f32 %v306_v45, %v290_v36  ;;  %v315_v47 = vrot.slane %v306_v45, %v314_v43 }
 0x24d   :  { %v309_v48 = vrot.slane %v307_v46, 7  ;;  %v316_v50 = vmul.f32 %v315_v47, %v281_v14  ;;  %v317_v51 = vmul.f32 %v315_v47, %v282_v20 }
 0x24f   :  { %v311_v53 = vsub.f32 %v963_v17, %v309_v48 }
 0x251   :  { %v321_v54 = vrot.slane %v311_v53, %v320_v52  ;;  %v499_v52 = vrot.slane %v58_v42, %v160_v49 }
 0x253   :  { %v323_v55 = vadd.f32 %v321_v54, %v317_v51  ;;  %v322_v56 = vadd.f32 %v321_v54, %v316_v50 }
 0x255   :  { %v324_v57 = vpack.c.bf16 %v323_v55, %v322_v56 }
 0x257   :  { %711 = vmatmul.mubr.bf16.vlgmr.msra.gmra.mrb[4].mxu0 %v324_v57 }
 0x32a   :  { %v428_v5 = vpop.f32.mrb[4].mxu0 }
 0x32b   :  { %v429_v6 = vadd.f32 %v428_v5, %v345_v4  ;;  %v712_v7 = vpop.f32.mrb[5].mxu0 }
 0x32c   :  { %v431_v8 = vpop.f32.mrb[6].mxu0 }
 0x32d   :  { %v435_v9 = vmax.f32 %v429_v6, 0.0  ;;  %v432_v10 = vadd.f32 %v431_v8, %v345_v4  ;;  %v713_v11 = vpop.f32.mrb[7].mxu0 }
 0x32f   :  { %v436_v12 = vmax.f32 %v432_v10, 0.0  ;;  %v445_v13 = vmul.f32 %v435_v9, %v435_v9 }
 0x331   :  { %v437_v14 = vadd.f32 %v436_v12, %v435_v9  ;;  %v446_v18 = vmul.f32 %v436_v12, %v436_v12 }
 0x333   :  { %v438_v19 = vrot.slane %v437_v14, 4  ;;  %v447_v20 = vadd.f32 %v446_v18, %v445_v13 }
 0x335   :  { %v439_v0 = vadd.f32 %v438_v19, %v437_v14  ;;  %v448_v21 = vrot.slane %v447_v20, 4 }
 0x337   :  { %v440_v22 = vrot.slane %v439_v0, 2  ;;  %v449_v23 = vadd.f32 %v448_v21, %v447_v20 }
 0x339   :  { %v441_v24 = vadd.f32 %v440_v22, %v439_v0  ;;  %v450_v25 = vrot.slane %v449_v23, 2 }
 0x33b   :  { %v442_v26 = vrot.slane %v441_v24, 1  ;;  %v451_v27 = vadd.f32 %v450_v25, %v449_v23 }
 0x33d   :  { %v443_v28 = vadd.f32 %v442_v26, %v441_v24  ;;  %v452_v29 = vrot.slane %v451_v27, 1 }
 0x33f   :  { %v444_v30 = vmul.f32 0.0625, %v443_v28  ;;  %v453_v31 = vadd.f32 %v452_v29, %v451_v27 }
 0x341   :  { %v454_v32 = vmul.f32 0.0625, %v453_v31  ;;  %v455_v33 = vmul.f32 %v444_v30, %v444_v30 }
 0x343   :  { %v456_v34 = vsub.f32 %v454_v32, %v455_v33 }
 0x345   :  { %v457_v35 = vmax.f32 %v456_v34, 0.0 }
 0x347   :  { %v458_v36 = vadd.f32 1e-05, %v457_v35 }
 0x349   :  { %774 = vrsqrt.f32 %v458_v36 }
 0x353   :  { %v775_v38 = vpop.eup %774 }
 0x354   :  { %v460_v39 = vmul.f32 %v775_v38, %v963_v17 }
 0x356   :  { %v461_v40 = vmul.f32 %v460_v39, %v444_v30  ;;  %v469_v41 = vrot.slane %v460_v39, %v468_v37 }
 0x358   :  { %v463_v43 = vrot.slane %v461_v40, 7  ;;  %v470_v44 = vmul.f32 %v469_v41, %v435_v9  ;;  %v471_v45 = vmul.f32 %v469_v41, %v436_v12 }
 0x35a   :  { %v465_v46 = vsub.f32 %v58_v42, %v463_v43 }
 0x35c   :  { %v475_v47 = vrot.slane %v465_v46, %v68_v16 }
 0x35e   :  { %v477_v48 = vadd.f32 %v475_v47, %v471_v45  ;;  %v476_v50 = vadd.f32 %v475_v47, %v470_v44 }
 0x360   :  { %v478_v51 = vpack.c.bf16 %v477_v48, %v476_v50 }
 0x362   :  { %731 = vmatmul.mubr.bf16.vlgmr.msra.gmra.mrb[4].mxu1 %v478_v51 }
 0x435   :  { %v582_v53 = vpop.f32.mrb[4].mxu1 }
 0x436   :  { %v583_v17 = vadd.f32 %v582_v53, %v499_v52  ;;  %v732_v54 = vpop.f32.mrb[5].mxu1 }
 0x437   :  { %v585_v55 = vpop.f32.mrb[6].mxu1 }
 0x438   :  { %589 = vst [vmem:[#allocation8] sm:$0xff] %v583_v17  ;;  %v586_v56 = vadd.f32 %v585_v55, %v499_v52  ;;  %v733_v57 = vpop.f32.mrb[7].mxu1 }
 0x43a   :  { %590 = vst [vmem:[#allocation8 + $0x8] sm:$0xff] %v586_v56 }
 0x43b   :  { %853 = shalt.err (!%p850_p0)
}
 0x43c   :  { %s854_s27 = scalar_lea.hbm %s1022_s3, 256 }
 0x43d   :  { %p855_p1 = scmp.ne.s32.totalorder %s1022_s3, %s854_s27  ;;  %p858_p2 = scmp.lt.u32.totalorder %s854_s27, %s1022_s3 }
 0x43f   :  { %p860_p3 = pnand %p858_p2, %p855_p1 }
 0x441   :  { %863 = shalt.err (!%p860_p3)
}
 0x442   :  { %602 = dma.vmem_to_hbm [thread:$0]  %s597_s23, 256, %s1022_s3, [#allocation4], %s874_s1, %s874_s1, %s875_s9  }
 0x443   :  { %868 = dma.done.wait [#allocation4], 256  }
 0x444   :  { %869 = vsyncadd [#allocation4], 4294967040 }
 0x445   :  { %606 = vsyncpa [#allocation3], 1 }
 0x446   :  { %607 = vsyncpa [#allocation6], 1 }
 0x447   :  { %608 = vsyncpa [#allocation4], 1 }

</bundles_post_ra>
